<compile_context>
chip_gen: v6e
topology: v6e:2x2x1
jax: 0.10.0
libtpu: 0.0.40
codegen_flags: <defaults>
</compile_context>

<pallas_src>
import math

import jax
import jax.numpy as jnp
from jax.experimental import pallas as pl
from jax.experimental.pallas import tpu as pltpu

FREQ = 256           # frequency_embedding_size
HIDDEN = 32          # hidden_size
MAX_PERIOD = 10000.0
HALF = FREQ // 2     # 128

# Packed parameter block layout: (P_ROWS, P_LANES) f32, ~155 KB.
P_LANES = 128        # == HALF; lane-dense rows
FREQS_ROW = 0        # row 0            : freqs (128,)
W2_ROW = 8           # rows 8..39       : w2.T zero-padded to (32, 128)   (8-aligned)
B1_ROW = 40          # row 40           : b1 (32,) in lanes 0:32          (8-aligned)
B2_ROW = 41          # row 41           : b2 zero-padded to (128,)        (NOT 8-aligned; fine, single-row slice)
W1_SIN_ROW = 48      # rows 48..175     : w1.T[:128]  (128, 32) in lanes 0:32
W1_COS_ROW = 176     # rows 176..303    : w1.T[128:]  (128, 32) in lanes 0:32
P_ROWS = 304


def _round_up(x, m):
    return ((x + m - 1) // m) * m


def _time_embedding_kernel(t_ref, p_ref, o_ref):
    t = t_ref[...]                                       # (TB, 1) f32

    # Precomputed freqs = exp(-ln(max_period) * arange(half) / half).
    freqs = p_ref[FREQS_ROW:FREQS_ROW + 1, :]            # (1, 128)
    arg = t * freqs                                      # (TB, 128)
    s = jnp.sin(arg)
    c = jnp.cos(arg)

    # Linear(FREQ -> HIDDEN): split-K dots instead of concat([sin, cos]) @ w1.
    # Rows [0:128] of w1 (in,out) multiply sin, rows [128:256] multiply cos,
    # matching the [sin, cos] concatenation order of the reference module.
    w1_sin = p_ref[W1_SIN_ROW:W1_SIN_ROW + HALF, 0:HIDDEN]   # (128, 32)
    w1_cos = p_ref[W1_COS_ROW:W1_COS_ROW + HALF, 0:HIDDEN]   # (128, 32)
    b1 = p_ref[B1_ROW:B1_ROW + 1, 0:HIDDEN]                  # (1, 32)
    h = (jnp.dot(s, w1_sin, preferred_element_type=jnp.float32)
         + jnp.dot(c, w1_cos, preferred_element_type=jnp.float32)
         + b1)

    # SiLU
    h = h * jax.nn.sigmoid(h)

    # Linear(HIDDEN -> HIDDEN). n_out is 32 (module-shaped output, masked
    # stores) or 128 (lane-dense output: w2/b2 columns 32:128 are zero, so
    # lanes 32:128 of the output are exactly zero).
    n_out = o_ref.shape[-1]
    w2 = p_ref[W2_ROW:W2_ROW + HIDDEN, 0:n_out]              # (32, n_out)
    b2 = p_ref[B2_ROW:B2_ROW + 1, 0:n_out]                   # (1, n_out)
    out = jnp.dot(h, w2, preferred_element_type=jnp.float32) + b2
    o_ref[...] = out.astype(o_ref.dtype)


def pack_params(w1, b1, w2, b2):
    """Pack torch-layout MLP params once (at init, not per step).

    w1: (HIDDEN, FREQ)   == nn.Linear(FREQ, HIDDEN).weight  (out, in)
    b1: (HIDDEN,)
    w2: (HIDDEN, HIDDEN) == nn.Linear(HIDDEN, HIDDEN).weight
    b2: (HIDDEN,)
    Returns a single (P_ROWS, P_LANES) f32 block consumed by time_embedding().
    """
    w1_io = jnp.asarray(w1, jnp.float32).T                     # (FREQ, HIDDEN)
    freqs = jnp.exp((-math.log(MAX_PERIOD) / HALF)
                    * jnp.arange(HALF, dtype=jnp.float32))     # (128,)
    p = jnp.zeros((P_ROWS, P_LANES), jnp.float32)
    p = p.at[FREQS_ROW, :HALF].set(freqs)
    p = p.at[W2_ROW:W2_ROW + HIDDEN, :HIDDEN].set(jnp.asarray(w2, jnp.float32).T)
    p = p.at[B1_ROW, :HIDDEN].set(jnp.asarray(b1, jnp.float32))
    p = p.at[B2_ROW, :HIDDEN].set(jnp.asarray(b2, jnp.float32))
    p = p.at[W1_SIN_ROW:W1_SIN_ROW + HALF, :HIDDEN].set(w1_io[:HALF])
    p = p.at[W1_COS_ROW:W1_COS_ROW + HALF, :HIDDEN].set(w1_io[HALF:])
    return p


def time_embedding(t, params, *, block_b=None, single_block_cutoff=255,
                   lane_dense_out=False):
    """t: () or (B,) float -> mlp(timestep_embedding(t)).

    Returns (B, HIDDEN) f32 by default; with lane_dense_out=True returns a
    (B, 128) slab whose lanes [:HIDDEN] hold the embedding (zeros elsewhere)
    so a fused consumer can read it without masked stores in this kernel.
    """
    if t.ndim == 0:
        t = t[None]
    B = t.shape[0]
    t2d = t.astype(jnp.float32).reshape(B, 1)
    n_out = P_LANES if lane_dense_out else HIDDEN

    if B <= single_block_cutoff:
        # Tiny batch: single-block launch, 2 input DMA descriptors, full
        # VMEM residency. This path is pure launch/DMA overhead.
        vmem = pl.BlockSpec(memory_space=pltpu.MemorySpace.VMEM)
        return pl.pallas_call(
            _time_embedding_kernel,
            out_shape=jax.ShapeDtypeStruct((B, n_out), jnp.float32),
            in_specs=[vmem, vmem],
            out_specs=vmem,
        )(t2d, params)

    # Large batch: tile over B. No padding / output slicing: grid = cdiv(B,
    # block_b) and uneven-last-block handling drops OOB writes (each output
    # row depends only on its own input row, so garbage in OOB input rows
    # never touches valid rows).
    if block_b is None:
        # >= 2 blocks so v7x's two TensorCores both work ("parallel" axis);
        # capped at 2048 rows so single-TC v5e/v6e take few large grid steps.
        block_b = min(2048, _round_up(pl.cdiv(B, 2), 8))
    nb = pl.cdiv(B, block_b)
    return pl.pallas_call(
        _time_embedding_kernel,
        out_shape=jax.ShapeDtypeStruct((B, n_out), jnp.float32),
        grid_spec=pltpu.PrefetchScalarGridSpec(
            num_scalar_prefetch=0,
            grid=(nb,),
            in_specs=[
                pl.BlockSpec((block_b, 1), lambda i: (i, 0)),
                # Constant index_map -> params stay resident; Pallas elides
                # the re-DMA when the block index is unchanged across steps.
                pl.BlockSpec((P_ROWS, P_LANES), lambda i: (0, 0)),
            ],
            out_specs=pl.BlockSpec((block_b, n_out), lambda i: (i, 0)),
        ),
        compiler_params=pltpu.CompilerParams(
            dimension_semantics=("parallel",)),
    )(t2d, params)


def _reference(t, w1, b1, w2, b2):
    """Pure-JAX reference matching the PyTorch forward (torch weight layout)."""
    exponent = -math.log(MAX_PERIOD) * jnp.arange(HALF, dtype=jnp.float32) / HALF
    arg = t[:, None].astype(jnp.float32) * jnp.exp(exponent)[None, :]
    emb = jnp.concatenate([jnp.sin(arg), jnp.cos(arg)], axis=-1)
    h = emb @ w1.T + b1
    h = h * jax.nn.sigmoid(h)
    return h @ w2.T + b2


if __name__ == "__main__":
    key = jax.random.PRNGKey(0)
    k_t, k_w1, k_b1, k_w2, k_b2, k_t2 = jax.random.split(key, 6)

    # Synthetic params in torch nn.Linear layout: weight (out, in), bias (out,).
    w1 = jax.random.normal(k_w1, (HIDDEN, FREQ), jnp.float32) * 0.02
    b1 = jax.random.normal(k_b1, (HIDDEN,), jnp.float32) * 0.02
    w2 = jax.random.normal(k_w2, (HIDDEN, HIDDEN), jnp.float32) * 0.02
    b2 = jax.random.normal(k_b2, (HIDDEN,), jnp.float32) * 0.02
    params = pack_params(w1, b1, w2, b2)

    # Small batch: single-block path, module-shaped (B, 32) output.
    B = 8
    t = jax.random.uniform(k_t, (B,), jnp.float32, 0.0, 1000.0)
    out = jax.block_until_ready(time_embedding(t, params))
    ref = jax.block_until_ready(_reference(t, w1, b1, w2, b2))
    assert out.shape == (B, HIDDEN), out.shape
    assert jnp.allclose(out, ref, atol=1e-4, rtol=1e-4), float(
        jnp.max(jnp.abs(out - ref)))

    # Small batch, lane-dense output (for a fused consumer): lanes [:32] match,
    # lanes 32: are exactly zero.
    out128 = jax.block_until_ready(time_embedding(t, params, lane_dense_out=True))
    assert out128.shape == (B, P_LANES), out128.shape
    assert jnp.allclose(out128[:, :HIDDEN], ref, atol=1e-4, rtol=1e-4)
    assert jnp.all(out128[:, HIDDEN:] == 0.0)

    # Larger, non-multiple batch: exercises the gridded (megacore-friendly)
    # path and the uneven last block (no pad / no output slice).
    B2 = 300
    t_big = jax.random.uniform(k_t2, (B2,), jnp.float32, 0.0, 1000.0)
    out_big = jax.block_until_ready(time_embedding(t_big, params))
    ref_big = jax.block_until_ready(_reference(t_big, w1, b1, w2, b2))
    assert out_big.shape == (B2, HIDDEN), out_big.shape
    assert jnp.allclose(out_big, ref_big, atol=1e-4, rtol=1e-4), float(
        jnp.max(jnp.abs(out_big - ref_big)))

    print("KERNEL_OK")
</pallas_src>

<mosaic_0001>
module attributes {stable_mosaic.version = 11 : i64} {
  func.func @_time_embedding_kernel(%arg0: memref<8x1xf32, #tpu.memory_space<vmem>>, %arg1: memref<304x128xf32, #tpu.memory_space<vmem>>, %arg2: memref<8x32xf32, #tpu.memory_space<vmem>>) attributes {dimension_semantics = [], scalar_prefetch = 0 : i64, scratch_operands = 0 : i64, tpu.core_type = #tpu.core_type<tc>} {
    %c0 = arith.constant 0 : index
    %c0_0 = arith.constant 0 : index
    %0 = vector.load %arg0[%c0, %c0_0] : memref<8x1xf32, #tpu.memory_space<vmem>>, vector<8x1xf32>
    %c0_1 = arith.constant 0 : index
    %c0_2 = arith.constant 0 : index
    %1 = vector.load %arg1[%c0_1, %c0_2] : memref<304x128xf32, #tpu.memory_space<vmem>>, vector<1x128xf32>
    %2 = vector.broadcast %0 : vector<8x1xf32> to vector<8x128xf32>
    %3 = vector.broadcast %1 : vector<1x128xf32> to vector<8x128xf32>
    %4 = arith.mulf %2, %3 : vector<8x128xf32>
    %5 = math.sin %4 : vector<8x128xf32>
    %6 = math.cos %4 : vector<8x128xf32>
    %c48 = arith.constant 48 : index
    %c0_3 = arith.constant 0 : index
    %7 = vector.load %arg1[%c48, %c0_3] : memref<304x128xf32, #tpu.memory_space<vmem>>, vector<128x32xf32>
    %c176 = arith.constant 176 : index
    %c0_4 = arith.constant 0 : index
    %8 = vector.load %arg1[%c176, %c0_4] : memref<304x128xf32, #tpu.memory_space<vmem>>, vector<128x32xf32>
    %c40 = arith.constant 40 : index
    %c0_5 = arith.constant 0 : index
    %9 = vector.load %arg1[%c40, %c0_5] : memref<304x128xf32, #tpu.memory_space<vmem>>, vector<1x32xf32>
    %cst = arith.constant dense<0.000000e+00> : vector<8x32xf32>
    %10 = tpu.matmul %5, %7, %cst {dimension_numbers = #tpu.dot_dimension_numbers<[1], [0], [0], [1], [0, 0, 1, 1], [], []>} : vector<8x128xf32>, vector<128x32xf32>, vector<8x32xf32> -> vector<8x32xf32>
    %cst_6 = arith.constant dense<0.000000e+00> : vector<8x32xf32>
    %11 = tpu.matmul %6, %8, %cst_6 {dimension_numbers = #tpu.dot_dimension_numbers<[1], [0], [0], [1], [0, 0, 1, 1], [], []>} : vector<8x128xf32>, vector<128x32xf32>, vector<8x32xf32> -> vector<8x32xf32>
    %12 = arith.addf %10, %11 : vector<8x32xf32>
    %13 = vector.broadcast %9 : vector<1x32xf32> to vector<8x32xf32>
    %14 = arith.addf %12, %13 : vector<8x32xf32>
    %15 = arith.negf %14 : vector<8x32xf32>
    %16 = math.exp %15 : vector<8x32xf32>
    %cst_7 = arith.constant 1.000000e+00 : f32
    %17 = vector.broadcast %cst_7 : f32 to vector<8x32xf32>
    %18 = arith.addf %17, %16 : vector<8x32xf32>
    %19 = arith.divf %17, %18 : vector<8x32xf32>
    %20 = arith.mulf %14, %19 : vector<8x32xf32>
    %c8 = arith.constant 8 : index
    %c0_8 = arith.constant 0 : index
    %21 = vector.load %arg1[%c8, %c0_8] : memref<304x128xf32, #tpu.memory_space<vmem>>, vector<32x32xf32>
    %c41 = arith.constant 41 : index
    %c0_9 = arith.constant 0 : index
    %22 = vector.load %arg1[%c41, %c0_9] : memref<304x128xf32, #tpu.memory_space<vmem>>, vector<1x32xf32>
    %cst_10 = arith.constant dense<0.000000e+00> : vector<8x32xf32>
    %23 = tpu.matmul %20, %21, %cst_10 {dimension_numbers = #tpu.dot_dimension_numbers<[1], [0], [0], [1], [0, 0, 1, 1], [], []>} : vector<8x32xf32>, vector<32x32xf32>, vector<8x32xf32> -> vector<8x32xf32>
    %24 = vector.broadcast %22 : vector<1x32xf32> to vector<8x32xf32>
    %25 = arith.addf %23, %24 : vector<8x32xf32>
    %c0_11 = arith.constant 0 : index
    %c0_12 = arith.constant 0 : index
    %26 = vector.load %arg2[%c0_11, %c0_12] : memref<8x32xf32, #tpu.memory_space<vmem>>, vector<8x32xf32>
    tpu.vector_store %arg2[%c0_11, %c0_12], %25 {strides = array<i32>} : memref<8x32xf32, #tpu.memory_space<vmem>>, vector<8x32xf32>,
    return
  }
}

</mosaic_0001>

<bundles_post_ra>
// kernel: tpu_custom_call.1
= control target key start
LH: loop header
LB: loop body
LE: loop exit
PB: predicated region body
PF: predicated region fallthrough
CT: control target
= control target key end

     0   :  { %7 = vsyncpa [#allocation3], 0  ;;  %s832_s0 = inlined_call_operand.vmem [shape: f32[8,1], index: 0, kind: input, shape index: {}]   ;;  %s833_s1 = inlined_call_operand.hbm [shape: f32[304,128], index: 1, kind: input, shape index: {}]   ;;  %s834_s2 = inlined_call_operand.hbm [shape: f32[8,32], index: 2, kind: output, shape index: {}]  }
   0x1   :  { %8 = vsyncpa [#allocation4], 0  ;;  %s732_s9 = smov [#allocation2]  }
   0x2   :  { %s16_s10 = sshll.u32 %s732_s9, 4  ;;  %s17_s10 = int_to_ptr.vmem [resolvable:$true] %s16_s10 }
   0x3   :  { %s696_s11 = scalar_lea.vmem %s17_s10, 4864  ;;  %p701_p1 = scmp.lt.s32.totalorder %s17_s10, %s17_s10 }
   0x4   :  { %p697_p0 = scmp.ne.s32.totalorder %s17_s10, %s696_s11  ;;  %p702_p2 = scmp.lt.s32.totalorder %s696_s11, %s696_s11 }
   0x6   :  { %p703_p3 = por %p702_p2, %p701_p1 }
   0x8   :  { %p704_p4 = pnand %p703_p3, %p697_p0 }
   0xa   :  { %707 = shalt.err (!%p704_p4)
}
   0xb   :  { %s733_s12 = smov 128   ;;  %s734_s13 = smov 8  }
   0xc   :  { %22 = dma.hbm_to_vmem [thread:$0]  %s833_s1, 4864, %s17_s10, [#allocation3], %s733_s12, %s733_s12, %s734_s13  }
   0xd   :  { %728 = dma.done.wait [#allocation3], 4864  }
   0xe   :  { %729 = vsyncadd [#allocation3], 4294962432  ;;  %v735_v0 = vmov 0   ;;  %v26_v1 = vld [vmem:[%s832_s0] sm:$0xff]  ;;  %v736_v2 = vmov 0.0   ;;  %v276_v3 = vld [vmem:[#allocation2 + $0x128] sm:$0xff] }
   0xf   :  { %679 = vset.pattern.permute.xlu0 %v735_v0  ;;  %581 = vmatprep.subr.mxu0 %v736_v2  ;;  %v260_v4 = vld [vmem:[#allocation2 + $0xa8] sm:$0xff]  ;;  %v275_v5 = vld [vmem:[#allocation2 + $0x120] sm:$0xff]  ;;  %v274_v7 = vld [vmem:[#allocation2 + $0x118] sm:$0xff]  ;;  %vm737_vm0 = vmmov 0   ;;  %v738_v48 = vmov 683565275  }
  0x10   :  { %30 = vperm.xlu0 %679, %v26_v1   ;;  %616 = vmatprep.subr.mxu1 %v736_v2  ;;  %v259_v6 = vld [vmem:[#allocation2 + $0xa0] sm:$0xff]  ;;  %v258_v8 = vld [vmem:[#allocation2 + $0x98] sm:$0xff]  ;;  %v273_v9 = vld [vmem:[#allocation2 + $0x110] sm:$0xff]  ;;  %v739_v50 = vmov 2475754826   ;;  %s744_s0 = smov [#allocation5]  }
  0x11   :  { %582 = vmatpush3.msra.mxu0 %v276_v3  ;;  %617 = vmatpush3.msra.mxu1 %v260_v4  ;;  %v257_v10 = vld [vmem:[#allocation2 + $0x90] sm:$0xff]  ;;  %v272_v11 = vld [vmem:[#allocation2 + $0x108] sm:$0xff]  ;;  %v271_v13 = vld [vmem:[#allocation2 + $0x100] sm:$0xff]  ;;  %v740_v53 = vmov 2131351028   ;;  %s520_s1 = sshll.u32 %s744_s0, 4  ;;  %s521_s1 = int_to_ptr.vmem [resolvable:$true] %s520_s1 }
  0x12   :  { %583 = vmatprep.subr.mxu0 %v736_v2  ;;  %618 = vmatprep.subr.mxu1 %v736_v2  ;;  %v256_v12 = vld [vmem:[#allocation2 + $0x88] sm:$0xff]  ;;  %v255_v14 = vld [vmem:[#allocation2 + $0x80] sm:$0xff]  ;;  %v270_v15 = vld [vmem:[#allocation2 + $0xf8] sm:$0xff]  ;;  %v741_v56 = vmov 2102212464   ;;  %s708_s18 = scalar_lea.vmem %s521_s1, 128  ;;  %p713_p6 = scmp.lt.s32.totalorder %s521_s1, %s521_s1 }
  0x13   :  { %584 = vmatpush3.msra.mxu0 %v275_v5  ;;  %619 = vmatpush3.msra.mxu1 %v259_v6  ;;  %v254_v16 = vld [vmem:[#allocation2 + $0x78] sm:$0xff]  ;;  %v269_v17 = vld [vmem:[#allocation2 + $0xf0] sm:$0xff]  ;;  %v268_v19 = vld [vmem:[#allocation2 + $0xe8] sm:$0xff]  ;;  %v742_v59 = vmov 920167782   ;;  %p709_p5 = scmp.ne.s32.totalorder %s521_s1, %s708_s18  ;;  %p714_p7 = scmp.lt.s32.totalorder %s708_s18, %s708_s18 }
  0x14   :  { %585 = vmatprep.subr.mxu0 %v736_v2  ;;  %620 = vmatprep.subr.mxu1 %v736_v2  ;;  %v253_v18 = vld [vmem:[#allocation2 + $0x70] sm:$0xff]  ;;  %v252_v20 = vld [vmem:[#allocation2 + $0x68] sm:$0xff]  ;;  %v267_v21 = vld [vmem:[#allocation2 + $0xe0] sm:$0xff]  ;;  %v743_v62 = vmov 1326507024  }
  0x15   :  { %586 = vmatpush3.msra.mxu0 %v274_v7  ;;  %621 = vmatpush3.msra.mxu1 %v258_v8  ;;  %v251_v22 = vld [vmem:[#allocation2 + $0x60] sm:$0xff]  ;;  %v266_v23 = vld [vmem:[#allocation2 + $0xd8] sm:$0xff]  ;;  %v265_v25 = vld [vmem:[#allocation2 + $0xd0] sm:$0xff]  ;;  %p715_p8 = por %p714_p7, %p713_p6 }
  0x16   :  { %587 = vmatprep.subr.mxu0 %v736_v2  ;;  %622 = vmatprep.subr.mxu1 %v736_v2  ;;  %v250_v24 = vld [vmem:[#allocation2 + $0x58] sm:$0xff]  ;;  %v249_v26 = vld [vmem:[#allocation2 + $0x50] sm:$0xff]  ;;  %v264_v27 = vld [vmem:[#allocation2 + $0xc8] sm:$0xff] }
  0x17   :  { %588 = vmatpush3.msra.mxu0 %v273_v9  ;;  %623 = vmatpush3.msra.mxu1 %v257_v10  ;;  %v248_v28 = vld [vmem:[#allocation2 + $0x48] sm:$0xff]  ;;  %v263_v29 = vld [vmem:[#allocation2 + $0xc0] sm:$0xff]  ;;  %v262_v31 = vld [vmem:[#allocation2 + $0xb8] sm:$0xff]  ;;  %p716_p9 = pnand %p715_p8, %p709_p5 }
  0x18   :  { %589 = vmatprep.subr.mxu0 %v736_v2  ;;  %624 = vmatprep.subr.mxu1 %v736_v2  ;;  %v247_v30 = vld [vmem:[#allocation2 + $0x40] sm:$0xff]  ;;  %v246_v32 = vld [vmem:[#allocation2 + $0x38] sm:$0xff]  ;;  %v261_v33 = vld [vmem:[#allocation2 + $0xb0] sm:$0xff] }
  0x19   :  { %590 = vmatpush3.msra.mxu0 %v272_v11  ;;  %625 = vmatpush3.msra.mxu1 %v256_v12  ;;  %v245_v34 = vld [vmem:[#allocation2 + $0x30] sm:$0xff]  ;;  %v529_v35 = vld [vmem:[#allocation2] ss:$0 sm:$0xff] }
  0x1a   :  { %591 = vmatprep.subr.mxu0 %v736_v2  ;;  %626 = vmatprep.subr.mxu1 %v736_v2 }
  0x1b   :  { %592 = vmatpush3.msra.mxu0 %v271_v13  ;;  %627 = vmatpush3.msra.mxu1 %v255_v14 }
  0x1c   :  { %593 = vmatprep.subr.mxu0 %v736_v2  ;;  %628 = vmatprep.subr.mxu1 %v736_v2 }
  0x1d   :  { %594 = vmatpush3.msra.mxu0 %v270_v15  ;;  %629 = vmatpush3.msra.mxu1 %v254_v16 }
  0x1e   :  { %595 = vmatprep.subr.mxu0 %v736_v2  ;;  %630 = vmatprep.subr.mxu1 %v736_v2 }
  0x1f   :  { %596 = vmatpush3.msra.mxu0 %v269_v17  ;;  %631 = vmatpush3.msra.mxu1 %v253_v18 }
  0x20   :  { %597 = vmatprep.subr.mxu0 %v736_v2  ;;  %632 = vmatprep.subr.mxu1 %v736_v2 }
  0x21   :  { %598 = vmatpush3.msra.mxu0 %v268_v19  ;;  %633 = vmatpush3.msra.mxu1 %v252_v20 }
  0x22   :  { %599 = vmatprep.subr.mxu0 %v736_v2  ;;  %634 = vmatprep.subr.mxu1 %v736_v2 }
  0x23   :  { %600 = vmatpush3.msra.mxu0 %v267_v21  ;;  %635 = vmatpush3.msra.mxu1 %v251_v22 }
  0x24   :  { %601 = vmatprep.subr.mxu0 %v736_v2  ;;  %636 = vmatprep.subr.mxu1 %v736_v2 }
  0x25   :  { %602 = vmatpush3.msra.mxu0 %v266_v23  ;;  %637 = vmatpush3.msra.mxu1 %v250_v24 }
  0x26   :  { %603 = vmatprep.subr.mxu0 %v736_v2  ;;  %638 = vmatprep.subr.mxu1 %v736_v2 }
  0x27   :  { %604 = vmatpush3.msra.mxu0 %v265_v25  ;;  %639 = vmatpush3.msra.mxu1 %v249_v26 }
  0x28   :  { %605 = vmatprep.subr.mxu0 %v736_v2  ;;  %640 = vmatprep.subr.mxu1 %v736_v2 }
  0x29   :  { %606 = vmatpush3.msra.mxu0 %v264_v27  ;;  %641 = vmatpush3.msra.mxu1 %v248_v28 }
  0x2a   :  { %607 = vmatprep.subr.mxu0 %v736_v2  ;;  %642 = vmatprep.subr.mxu1 %v736_v2 }
  0x2b   :  { %608 = vmatpush3.msra.mxu0 %v263_v29  ;;  %643 = vmatpush3.msra.mxu1 %v247_v30 }
  0x2c   :  { %609 = vmatprep.subr.mxu0 %v736_v2  ;;  %644 = vmatprep.subr.mxu1 %v736_v2 }
  0x2d   :  { %610 = vmatpush3.msra.mxu0 %v262_v31  ;;  %645 = vmatpush3.msra.mxu1 %v246_v32 }
  0x2e   :  { %611 = vmatprep.subr.mxu0 %v736_v2  ;;  %646 = vmatprep.subr.mxu1 %v736_v2 }
  0x2f   :  { %612 = vmatpush3.msra.mxu0 %v261_v33  ;;  %613 = vmatprep.mubr.msk.f32.mxu0 %vm737_vm0, %v736_v2 }
  0x30   :  { %647 = vmatpush3.msra.mxu1 %v245_v34  ;;  %648 = vmatprep.mubr.msk.f32.mxu1 %vm737_vm0, %v736_v2 }
  0x31   :  { %651 = vmatprep.subr.mxu0 %v736_v2 }
  0x8b   :  { %v31_v36 = vpop.permute.xlu0 %30 }
  0x8c   :  { %v803_v37 = vmul.f32 %v529_v35, %v31_v36 }
  0x8e   :  { %v41_v38 = vand.u32 2139095040, %v803_v37  ;;  %v38_v42 = vand.u32 2147483647, %v803_v37  ;;  %vm40_vm8 = vcmp.lt.s32.totalorder %v803_v37, 0 }
  0x90   :  { %v42_v39 = vshrl.u32 %v41_v38, 23  ;;  %v45_v45 = vand.u32 8388607, %v38_v42  ;;  %vm39_vm9 = vcmp.le.f32.partialorder %v38_v42, 0.7853982 }
  0x92   :  { %v530_v40 = vadd.s32 4294967169, %v42_v39  ;;  %v46_v0 = vor.u32 8388608, %v45_v45 }
  0x94   :  { %v48_v41 = vadd.s32 1, %v530_v40  ;;  %v86_v15 = vshll.u32 %v46_v0, 8 }
  0x96   :  { %vm49_vm1 = vcmp.gt.s32.totalorder %v48_v41, 0 }
  0x97   :  { %v50_v43 = vsel %vm49_vm1, %v48_v41, 0  ;;  %vm130_vm1 = vweird.f32 %v803_v37 }
  0x98   :  { %v52_v44 = vand.u32 31, %v50_v43  ;;  %v51_v47 = vshrl.u32 %v50_v43, 5 }
  0x9a   :  { %v53_v46 = vsub.s32 32, %v52_v44  ;;  %v55_v49 = vshll.u32 %v738_v48, %v52_v44  ;;  %v58_v51 = vshll.u32 %v739_v50, %v52_v44  ;;  %v61_v55 = vshll.u32 %v740_v53, %v52_v44 }
  0x9b   :  { %v64_v58 = vshll.u32 %v741_v56, %v52_v44  ;;  %v67_v61 = vshll.u32 %v742_v59, %v52_v44  ;;  %vm70_vm2 = vcmp.lt.s32.totalorder %v51_v47, 1  ;;  %vm73_vm3 = vcmp.lt.s32.totalorder %v51_v47, 4 }
  0x9c   :  { %v56_v52 = vshrl.u32 %v739_v50, %v53_v46  ;;  %v59_v54 = vshrl.u32 %v740_v53, %v53_v46  ;;  %v62_v57 = vshrl.u32 %v741_v56, %v53_v46  ;;  %v65_v60 = vshrl.u32 %v742_v59, %v53_v46 }
  0x9d   :  { %v68_v63 = vshrl.u32 %v743_v62, %v53_v46  ;;  %v54_v10 = vshrl.u32 %v738_v48, %v53_v46  ;;  %vm72_vm4 = vcmp.lt.s32.totalorder %v51_v47, 3  ;;  %vm71_vm5 = vcmp.lt.s32.totalorder %v51_v47, 2 }
  0x9e   :  { %v57_v1 = vor.u32 %v56_v52, %v55_v49  ;;  %v60_v3 = vor.u32 %v59_v54, %v58_v51  ;;  %v63_v4 = vor.u32 %v62_v57, %v61_v55  ;;  %v66_v5 = vor.u32 %v65_v60, %v64_v58 }
  0x9f   :  { %v69_v6 = vor.u32 %v68_v63, %v67_v61 }
  0xa0   :  { %v75_v7 = vsel %vm73_vm3, %v63_v4, 2102212464  ;;  %v78_v8 = vsel %vm70_vm2, %v57_v1, %v60_v3  ;;  %v82_v9 = vsel %vm70_vm2, %v60_v3, %v63_v4  ;;  %v79_v11 = vsel %vm73_vm3, %v66_v5, 920167782 }
  0xa1   :  { %v83_v12 = vsel %vm73_vm3, %v69_v6, 1326507024  ;;  %v80_v13 = vsel %vm72_vm4, %v63_v4, %v79_v11  ;;  %v74_v16 = vsel %vm70_vm2, %v54_v10, %v57_v1  ;;  %v76_v17 = vsel %vm72_vm4, %v60_v3, %v75_v7  ;;  %v432_v10 = vld [vmem:[#allocation2 + $0x18] sm:$0xff]  ;;  %v431_v11 = vld [vmem:[#allocation2 + $0x10] sm:$0xff] }
  0xa2   :  { %v84_v14 = vsel %vm72_vm4, %v66_v5, %v83_v12  ;;  %v81_v18 = vsel %vm71_vm5, %v78_v8, %v80_v13  ;;  %v77_v24 = vsel %vm71_vm5, %v74_v16, %v76_v17  ;;  %v538_v13 = vld [vmem:[#allocation2 + $0x28] ss:$0 sm:$0xff] }
  0xa3   :  { %v85_v19 = vsel %vm71_vm5, %v82_v9, %v84_v14  ;;  %v812_v22 = vmul.u32.u64.low %v86_v15, %v81_v18  ;;  %v813_v23 = vmul.u32.u64.high %v86_v15, %v81_v18, %v812_v22  ;;  %v93_v26 = vmul.u32 %v86_v15, %v77_v24  ;;  %v433_v9 = vld [vmem:[#allocation2 + $0x20] sm:$0xff]  ;;  %v540_v24 = vld [vmem:[#allocation2 + $0x29] ss:$0 sm:$0xff] }
  0xa4   :  { %v809_v20 = vmul.u32.u64.low %v86_v15, %v85_v19  ;;  %v810_v21 = vmul.u32.u64.high %v86_v15, %v85_v19, %v809_v20 }
  0xa5   :  { %v96_v25 = vadd.s32 1, %v813_v23 }
  0xa6   :  { %vm95_vm6 = vc.u32 %v810_v21, %v812_v22  ;;  %v94_v39 = vadd.s32 %v812_v22, %v810_v21 }
  0xa7   :  { %v97_v27 = vsel %vm95_vm6, %v96_v25, %v813_v23 }
  0xa8   :  { %v98_v28 = vadd.s32 %v97_v27, %v93_v26 }
  0xaa   :  { %v99_v29 = vadd.s32 536870912, %v98_v28 }
  0xac   :  { %v100_v30 = vshrl.u32 %v99_v29, 30 }
  0xae   :  { %v101_v31 = vshll.u32 %v100_v30, 30  ;;  %v124_v53 = vsub.s32 4, %v100_v30 }
  0xb0   :  { %v102_v32 = vsub.s32 %v98_v28, %v101_v31  ;;  %v125_v56 = vsel %vm40_vm8, %v124_v53, %v100_v30 }
  0xb1   :  { %v127_v57 = vsel %vm39_vm9, 0, %v125_v56 }
  0xb2   :  { %v104_v33 = vsub.s32 0, %v102_v32  ;;  %v131_v58 = vadd.s32 3, %v127_v57  ;;  %v235_v59 = vand.u32 3, %v127_v57 }
  0xb4   :  { %v531_v34 = vmin.u32 %v104_v33, %v102_v32  ;;  %v132_v60 = vand.u32 3, %v131_v58  ;;  %vm240_vm10 = vcmp.eq.s32.totalorder %v235_v59, 2  ;;  %vm237_vm12 = vcmp.eq.s32.totalorder %v235_v59, 0 }
  0xb5   :  { %vm236_vm14 = vcmp.lt.s32.totalorder %v235_v59, 2 }
  0xb6   :  { %v106_v35 = vclz %v531_v34  ;;  %vm137_vm11 = vcmp.eq.s32.totalorder %v132_v60, 2  ;;  %vm134_vm13 = vcmp.eq.s32.totalorder %v132_v60, 0  ;;  %vm133_vm15 = vcmp.lt.s32.totalorder %v132_v60, 2 }
  0xb8   :  { %v532_v36 = vadd.s32 4294967294, %v106_v35 }
  0xba   :  { %vm533_vm7 = vcmp.lt.s32.totalorder %v532_v36, 0 }
  0xbb   :  { %v109_v38 = vsel %vm533_vm7, 0, %v532_v36 }
  0xbc   :  { %v110_v40 = vsub.s32 32, %v109_v38  ;;  %v114_v41 = vsub.s32 4294967266, %v109_v38  ;;  %v111_v43 = vshll.u32 %v102_v32, %v109_v38 }
  0xbe   :  { %v112_v44 = vshrl.u32 %v94_v39, %v110_v40  ;;  %v115_v45 = vadd.s32 127, %v114_v41 }
  0xc0   :  { %v113_v46 = vor.u32 %v112_v44, %v111_v43  ;;  %v116_v47 = vshll.u32 %v115_v45, 23 }
  0xc2   :  { %v117_v48 = vor.u32 4788187, %v116_v47  ;;  %v120_v50 = vcvt.s32.f32 %v113_v46 }
  0xc4   :  { %v118_v49 = vand.u32 2147483647, %v117_v48 }
  0xc6   :  { %v121_v51 = vmul.f32 %v120_v50, %v118_v49 }
  0xc8   :  { %v122_v52 = vxor.u32 2147483648, %v121_v51 }
  0xca   :  { %v123_v54 = vsel %vm40_vm8, %v122_v52, %v121_v51 }
  0xcb   :  { %v126_v55 = vsel %vm39_vm9, %v803_v37, %v123_v54  ;;  %v430_v37 = vld [vmem:[#allocation2 + $0x8] sm:$0xff] }
  0xcc   :  { %680 = vcosq.f32 %v126_v55 }
  0xcd   :  { %682 = vsinq.f32 %v126_v55 }
  0xd9   :  { %v681_v61 = vpop.eup %680 }
  0xda   :  { %v683_v62 = vpop.eup %682  ;;  %v138_v63 = vxor.u32 2147483648, %v681_v61 }
  0xdb   :  { %v135_v0 = vxor.u32 2147483648, %v683_v62 }
  0xdc   :  { %v242_v1 = vsel %vm240_vm10, %v138_v63, %v683_v62  ;;  %v139_v3 = vsel %vm137_vm11, %v138_v63, %v683_v62 }
  0xdd   :  { %v239_v42 = vsel %vm237_vm12, %v681_v61, %v135_v0  ;;  %v136_v4 = vsel %vm134_vm13, %v681_v61, %v135_v0 }
  0xde   :  { %v243_v5 = vsel %vm236_vm14, %v239_v42, %v242_v1  ;;  %v140_v6 = vsel %vm133_vm15, %v136_v4, %v139_v3 }
  0xdf   :  { %v244_v7 = vsel %vm130_vm1, nan, %v243_v5  ;;  %v141_v8 = vsel %vm130_vm1, nan, %v140_v6 }
  0xe0   :  { %614 = vmatmul.mubr.f32.vlgmr.msra.gmra.mxu0 %v244_v7  ;;  %649 = vmatmul.mubr.f32.vlgmr.msra.gmra.mxu1 %v141_v8 }
  0xe1   :  { %659 = vmatprep.mubr.msk.f32.mxu0 %vm737_vm0, %v736_v2  ;;  %652 = vmatpush3.msra.mxu0 %v433_v9  ;;  %vm439_vm0 = vcmask 261120  }
  0xe2   :  { %653 = vmatprep.subr.mxu0 %v736_v2 }
  0xe3   :  { %654 = vmatpush3.msra.mxu0 %v432_v10 }
  0xe4   :  { %655 = vmatprep.subr.mxu0 %v736_v2 }
  0xe5   :  { %656 = vmatpush3.msra.mxu0 %v431_v11 }
  0xe6   :  { %657 = vmatprep.subr.mxu0 %v736_v2 }
  0xe7   :  { %658 = vmatpush3.msra.mxu0 %v430_v37 }
 0x1a0   :  { %v344_v12 = vpop.f32.mrf.mxu0  ;;  %v414_v14 = vpop.f32.mrf.mxu1 }
 0x1a1   :  { %v415_v15 = vadd.f32 %v414_v14, %v344_v12 }
 0x1a2   :  { %v615_v16 = vpop.f32.mrf.mxu0  ;;  %v650_v17 = vpop.f32.mrf.mxu1 }
 0x1a3   :  { %v422_v18 = vadd.f32 %v538_v13, %v415_v15 }
 0x1a5   :  { %v539_v19 = vmul.f32 -1.442695, %v422_v18 }
 0x1a7   :  { %684 = vpow2.f32 %v539_v19 }
 0x1b4   :  { %v685_v20 = vpop.eup %684 }
 0x1b5   :  { %v426_v21 = vadd.f32 1.0, %v685_v20 }
 0x1b7   :  { %686 = vrcp.f32 %v426_v21 }
 0x1c4   :  { %v687_v22 = vpop.eup %686 }
 0x1c5   :  { %v429_v23 = vmul.f32 %v687_v22, %v422_v18 }
 0x1c7   :  { %660 = vmatmul.mubr.msk.f32.vlgmr.msra.gmra.mxu0 %vm439_vm0, %v429_v23 }
 0x287   :  { %v509_v2 = vpop.f32.mrf.mxu0 }
 0x288   :  { %v510_v25 = vadd.f32 %v540_v24, %v509_v2 }
 0x289   :  { %v661_v26 = vpop.f32.mrf.mxu0 }
 0x28a   :  { %513 = vst.msk [vmem:[#allocation5] sm:$0xff] %vm439_vm0, %v510_v25 }
 0x28b   :  { %719 = shalt.err (!%p716_p9)
}
 0x28c   :  { %523 = dma.vmem_to_hbm [thread:$0]  %s521_s1, 128, %s834_s2, [#allocation4]  }
 0x28d   :  { %730 = dma.done.wait [#allocation4], 128  }
 0x28e   :  { %731 = vsyncadd [#allocation4], 4294967168 }
 0x28f   :  { %527 = vsyncpa [#allocation3], 1 }
 0x290   :  { %528 = vsyncpa [#allocation4], 1 }

</bundles_post_ra>
